<compile_context>
chip_gen: v5e
topology: v5e:2x2
jax: 0.10.0
libtpu: 0.0.40
codegen_flags: <defaults>
</compile_context>

<pallas_src>
import jax
import jax.numpy as jnp
from jax.experimental import pallas as pl
from jax.experimental.pallas import tpu as pltpu


def _gelu_tanh(x):
    # TODO(synk): PyTorch nn.GELU() default is the exact erf formulation; Mosaic
    # has no reliable erf lowering, so the tanh approximation is used here and in
    # the reference (max abs deviation ~1e-3 vs erf-GELU).
    c = 0.7978845608028654  # sqrt(2/pi)
    return 0.5 * x * (1.0 + jnp.tanh(c * (x + 0.044715 * x * x * x)))


def _layernorm(x, gamma, beta, eps=1e-5):
    mu = jnp.mean(x, axis=-1, keepdims=True)
    xc = x - mu
    var = jnp.mean(xc * xc, axis=-1, keepdims=True)
    return xc * (gamma * jax.lax.rsqrt(var + eps)) + beta


def _addnorm_kernel(x_ref, vec_ref, w_ref, out_ref):
    # vec rows: 0 gamma1, 1 beta1, 2 ff_bias1, 3 ff_bias2, 4 gamma2, 5 beta2
    g1 = vec_ref[0:1, :]
    be1 = vec_ref[1:2, :]
    b1 = vec_ref[2:3, :]
    b2 = vec_ref[3:4, :]
    g2 = vec_ref[4:5, :]
    be2 = vec_ref[5:6, :]

    mm_dtype = w_ref.dtype  # bf16 weights -> full-rate MXU; f32 accumulation below

    # norm1 (dropout with p=0.0 is identity); stats always in f32.
    x = x_ref[...].astype(jnp.float32)
    h = _layernorm(x, g1, be1)

    # FeedForward: Linear -> (Dropout) -> GELU -> Linear -> (Dropout)
    # TODO(synk): element-wise math kept in f32 so the same kernel is optimal on
    # v5e (no bf16 VPU/EUP); a bf16 element-wise path would double VALU
    # throughput on v6e/v7x once those become the binding slot.
    z1 = jnp.dot(h.astype(mm_dtype), w_ref[0],
                 preferred_element_type=jnp.float32) + b1
    a = _gelu_tanh(z1)
    z2 = jnp.dot(a.astype(mm_dtype), w_ref[1],
                 preferred_element_type=jnp.float32) + b2

    # residual (with pre-dropout h) + norm2
    out_ref[...] = _layernorm(z2 + h, g2, be2).astype(out_ref.dtype)


def _round_up(x, m):
    return (x + m - 1) // m * m


def pack_addnorm_params(gamma1, beta1, w1, b1, w2, b2, gamma2, beta2,
                        *, mm_dtype=jnp.float32):
    """Pack parameters ONCE at module init (keeps the per-call path copy-free).

    w1/w2 are PyTorch-layout (out, in) = (D, D).  Vectors stay f32 (they feed
    LayerNorm / bias adds on the f32 accumulators); weights are stored
    pre-transposed in `mm_dtype` (bf16 for bf16 activations -> full-rate MXU).
    """
    vecs = jnp.stack([gamma1, beta1, b1, b2, gamma2, beta2],
                     axis=0).astype(jnp.float32)            # (6, D)
    wts = jnp.stack([w1.T, w2.T], axis=0).astype(mm_dtype)  # (2, D_in, D_out)
    return vecs, wts


def addnorm_forward(x, vecs, wts, *, block_rows=1024):
    """x: (..., D); vecs: (6, D) f32; wts: (2, D, D).  Output keeps x.dtype."""
    orig_shape = x.shape
    D = orig_shape[-1]
    xf = x.reshape(-1, D)        # layout-preserving reshape, no dtype/pad copies
    R = xf.shape[0]

    # Row tile: one full block for small problems (block == full array dim is a
    # legal layout for any R); otherwise multiples of 8 chosen so the grid has
    # >= 2 "parallel" steps (shards across v7x's two TensorCores) and blocks are
    # ~0.5 MiB+ to amortize per-step overhead.  Ragged last tile is fine: the op
    # is per-row and Pallas masks out-of-bounds output rows.
    if R <= 512:
        tm = R
    else:
        tm = min(block_rows, _round_up(pl.cdiv(R, 2), 8))
    grid = (pl.cdiv(R, tm),)

    io_bytes = jnp.dtype(x.dtype).itemsize
    cost = pl.CostEstimate(
        flops=4 * R * D * D + 20 * R * D,      # two DxD matmuls + LN/GELU vector ops
        transcendentals=R * D,                 # tanh per element (rsqrt negligible)
        bytes_accessed=2 * R * D * io_bytes
        + vecs.size * 4 + wts.size * jnp.dtype(wts.dtype).itemsize,
    )

    out = pl.pallas_call(
        _addnorm_kernel,
        out_shape=jax.ShapeDtypeStruct((R, D), x.dtype),
        grid_spec=pltpu.PrefetchScalarGridSpec(
            num_scalar_prefetch=0,
            grid=grid,
            in_specs=[
                pl.BlockSpec((tm, D), lambda i: (i, 0)),       # activations (tiled rows)
                pl.BlockSpec((6, D), lambda i: (0, 0)),        # LN gammas/betas + FF biases
                pl.BlockSpec((2, D, D), lambda i: (0, 0, 0)),  # FF weights (pre-transposed)
            ],
            out_specs=pl.BlockSpec((tm, D), lambda i: (i, 0)),
        ),
        compiler_params=pltpu.CompilerParams(
            dimension_semantics=("parallel",)),
        cost_estimate=cost,
    )(xf, vecs, wts)

    return out.reshape(orig_shape)


if __name__ == "__main__":
    # Small transformer-ish shapes: batch=2, seq=16, d_model=128 (lane-dense).
    B, S, D = 2, 16, 128

    key = jax.random.PRNGKey(0)
    ks = jax.random.split(key, 9)

    x = jax.random.normal(ks[0], (B, S, D), dtype=jnp.float32)
    gamma1 = 1.0 + 0.1 * jax.random.normal(ks[1], (D,), dtype=jnp.float32)
    beta1 = 0.1 * jax.random.normal(ks[2], (D,), dtype=jnp.float32)
    w1 = jax.random.normal(ks[3], (D, D), dtype=jnp.float32) / jnp.sqrt(D)   # (out, in)
    b1 = 0.1 * jax.random.normal(ks[4], (D,), dtype=jnp.float32)
    w2 = jax.random.normal(ks[5], (D, D), dtype=jnp.float32) / jnp.sqrt(D)   # (out, in)
    b2 = 0.1 * jax.random.normal(ks[6], (D,), dtype=jnp.float32)
    gamma2 = 1.0 + 0.1 * jax.random.normal(ks[7], (D,), dtype=jnp.float32)
    beta2 = 0.1 * jax.random.normal(ks[8], (D,), dtype=jnp.float32)

    fwd = jax.jit(addnorm_forward)

    # Pure-JAX reference (same semantics, same tanh-GELU).
    def _ln_ref(v, g, b, eps=1e-5):
        mu = v.mean(-1, keepdims=True)
        vc = v - mu
        var = (vc * vc).mean(-1, keepdims=True)
        return vc * jax.lax.rsqrt(var + eps) * g + b

    def _ref(xv, w1v, w2v):
        h = _ln_ref(xv, gamma1, beta1)
        z1 = jnp.dot(h, w1v.T, precision="highest") + b1
        z2 = jnp.dot(_gelu_tanh(z1), w2v.T, precision="highest") + b2
        return _ln_ref(z2 + h, gamma2, beta2)

    # ---- f32 I/O path ----
    vecs, wts = pack_addnorm_params(gamma1, beta1, w1, b1, w2, b2, gamma2, beta2,
                                    mm_dtype=jnp.float32)
    out = jax.block_until_ready(fwd(x, vecs, wts))
    ref = _ref(x, w1, w2)
    assert out.dtype == x.dtype
    assert jnp.allclose(out, ref, atol=5e-3, rtol=5e-3), \
        float(jnp.max(jnp.abs(out - ref)))

    # ---- bf16 I/O path (halved HBM bytes, bf16 MXU operands, f32 stats) ----
    x_bf = x.astype(jnp.bfloat16)
    vecs_bf, wts_bf = pack_addnorm_params(gamma1, beta1, w1, b1, w2, b2,
                                          gamma2, beta2, mm_dtype=jnp.bfloat16)
    out_bf = jax.block_until_ready(fwd(x_bf, vecs_bf, wts_bf))
    assert out_bf.dtype == jnp.bfloat16
    # Reference with the same quantized inputs/weights but f32 math.
    w1q = w1.astype(jnp.bfloat16).astype(jnp.float32)
    w2q = w2.astype(jnp.bfloat16).astype(jnp.float32)
    ref_bf = _ref(x_bf.astype(jnp.float32), w1q, w2q)
    diff = jnp.max(jnp.abs(out_bf.astype(jnp.float32) - ref_bf))
    assert jnp.allclose(out_bf.astype(jnp.float32), ref_bf, atol=5e-2, rtol=5e-2), \
        float(diff)

    print("KERNEL_OK")
</pallas_src>

<mosaic_0001>
module attributes {stable_mosaic.version = 11 : i64} {
  func.func @_addnorm_kernel(%arg0: i32, %arg1: memref<32x128xf32, #tpu.memory_space<vmem>>, %arg2: memref<6x128xf32, #tpu.memory_space<vmem>>, %arg3: memref<2x128x128xf32, #tpu.memory_space<vmem>>, %arg4: memref<32x128xf32, #tpu.memory_space<vmem>>) attributes {dimension_semantics = [#tpu.dimension_semantics<parallel>], iteration_bounds = array<i64: 1>, scalar_prefetch = 0 : i64, scratch_operands = 0 : i64, tpu.core_type = #tpu.core_type<tc>, window_params = [{transform_indices = @transform_0, window_bounds = array<i64: 32, 128>}, {pipeline_mode = #tpu.pipeline_mode<synchronous>, transform_indices = @transform_1, window_bounds = array<i64: 6, 128>}, {pipeline_mode = #tpu.pipeline_mode<synchronous>, transform_indices = @transform_2, window_bounds = array<i64: 2, 128, 128>}, {transform_indices = @transform_3, window_bounds = array<i64: 32, 128>}]} {
    %c0 = arith.constant 0 : index
    %c0_0 = arith.constant 0 : index
    %0 = vector.load %arg2[%c0, %c0_0] : memref<6x128xf32, #tpu.memory_space<vmem>>, vector<1x128xf32>
    %c1 = arith.constant 1 : index
    %c0_1 = arith.constant 0 : index
    %1 = vector.load %arg2[%c1, %c0_1] : memref<6x128xf32, #tpu.memory_space<vmem>>, vector<1x128xf32>
    %c2 = arith.constant 2 : index
    %c0_2 = arith.constant 0 : index
    %2 = vector.load %arg2[%c2, %c0_2] : memref<6x128xf32, #tpu.memory_space<vmem>>, vector<1x128xf32>
    %c3 = arith.constant 3 : index
    %c0_3 = arith.constant 0 : index
    %3 = vector.load %arg2[%c3, %c0_3] : memref<6x128xf32, #tpu.memory_space<vmem>>, vector<1x128xf32>
    %c4 = arith.constant 4 : index
    %c0_4 = arith.constant 0 : index
    %4 = vector.load %arg2[%c4, %c0_4] : memref<6x128xf32, #tpu.memory_space<vmem>>, vector<1x128xf32>
    %c5 = arith.constant 5 : index
    %c0_5 = arith.constant 0 : index
    %5 = vector.load %arg2[%c5, %c0_5] : memref<6x128xf32, #tpu.memory_space<vmem>>, vector<1x128xf32>
    %c0_6 = arith.constant 0 : index
    %c0_7 = arith.constant 0 : index
    %6 = vector.load %arg1[%c0_6, %c0_7] : memref<32x128xf32, #tpu.memory_space<vmem>>, vector<32x128xf32>
    %cst = arith.constant dense<0.000000e+00> : vector<32xf32>
    %7 = vector.multi_reduction <add>, %6, %cst [1] : vector<32x128xf32> to vector<32xf32>
    %8 = vector.shape_cast %7 : vector<32xf32> to vector<32x1xf32>
    %cst_8 = arith.constant 1.280000e+02 : f32
    %9 = vector.broadcast %cst_8 : f32 to vector<32x1xf32>
    %10 = arith.divf %8, %9 : vector<32x1xf32>
    %11 = vector.broadcast %10 : vector<32x1xf32> to vector<32x128xf32>
    %12 = arith.subf %6, %11 : vector<32x128xf32>
    %13 = arith.mulf %12, %12 : vector<32x128xf32>
    %cst_9 = arith.constant dense<0.000000e+00> : vector<32xf32>
    %14 = vector.multi_reduction <add>, %13, %cst_9 [1] : vector<32x128xf32> to vector<32xf32>
    %15 = vector.shape_cast %14 : vector<32xf32> to vector<32x1xf32>
    %cst_10 = arith.constant 1.280000e+02 : f32
    %16 = vector.broadcast %cst_10 : f32 to vector<32x1xf32>
    %17 = arith.divf %15, %16 : vector<32x1xf32>
    %cst_11 = arith.constant 9.99999974E-6 : f32
    %18 = vector.broadcast %cst_11 : f32 to vector<32x1xf32>
    %19 = arith.addf %17, %18 : vector<32x1xf32>
    %20 = math.rsqrt %19 : vector<32x1xf32>
    %21 = vector.broadcast %0 : vector<1x128xf32> to vector<32x128xf32>
    %22 = vector.broadcast %20 : vector<32x1xf32> to vector<32x128xf32>
    %23 = arith.mulf %21, %22 : vector<32x128xf32>
    %24 = arith.mulf %12, %23 : vector<32x128xf32>
    %25 = vector.broadcast %1 : vector<1x128xf32> to vector<32x128xf32>
    %26 = arith.addf %24, %25 : vector<32x128xf32>
    %c0_12 = arith.constant 0 : index
    %c0_13 = arith.constant 0 : index
    %c0_14 = arith.constant 0 : index
    %27 = vector.load %arg3[%c0_12, %c0_13, %c0_14] : memref<2x128x128xf32, #tpu.memory_space<vmem>>, vector<1x128x128xf32>
    %28 = vector.shape_cast %27 : vector<1x128x128xf32> to vector<128x128xf32>
    %cst_15 = arith.constant dense<0.000000e+00> : vector<32x128xf32>
    %29 = tpu.matmul %26, %28, %cst_15 {dimension_numbers = #tpu.dot_dimension_numbers<[1], [0], [0], [1], [0, 0, 1, 1], [], []>} : vector<32x128xf32>, vector<128x128xf32>, vector<32x128xf32> -> vector<32x128xf32>
    %30 = vector.broadcast %2 : vector<1x128xf32> to vector<32x128xf32>
    %31 = arith.addf %29, %30 : vector<32x128xf32>
    %cst_16 = arith.constant 5.000000e-01 : f32
    %32 = vector.broadcast %cst_16 : f32 to vector<32x128xf32>
    %33 = arith.mulf %32, %31 : vector<32x128xf32>
    %cst_17 = arith.constant 4.471500e-02 : f32
    %34 = vector.broadcast %cst_17 : f32 to vector<32x128xf32>
    %35 = arith.mulf %34, %31 : vector<32x128xf32>
    %36 = arith.mulf %35, %31 : vector<32x128xf32>
    %37 = arith.mulf %36, %31 : vector<32x128xf32>
    %38 = arith.addf %31, %37 : vector<32x128xf32>
    %cst_18 = arith.constant 0.797884583 : f32
    %39 = vector.broadcast %cst_18 : f32 to vector<32x128xf32>
    %40 = arith.mulf %39, %38 : vector<32x128xf32>
    %41 = math.tanh %40 : vector<32x128xf32>
    %cst_19 = arith.constant 1.000000e+00 : f32
    %42 = vector.broadcast %cst_19 : f32 to vector<32x128xf32>
    %43 = arith.addf %42, %41 : vector<32x128xf32>
    %44 = arith.mulf %33, %43 : vector<32x128xf32>
    %c1_20 = arith.constant 1 : index
    %c0_21 = arith.constant 0 : index
    %c0_22 = arith.constant 0 : index
    %45 = vector.load %arg3[%c1_20, %c0_21, %c0_22] : memref<2x128x128xf32, #tpu.memory_space<vmem>>, vector<1x128x128xf32>
    %46 = vector.shape_cast %45 : vector<1x128x128xf32> to vector<128x128xf32>
    %cst_23 = arith.constant dense<0.000000e+00> : vector<32x128xf32>
    %47 = tpu.matmul %44, %46, %cst_23 {dimension_numbers = #tpu.dot_dimension_numbers<[1], [0], [0], [1], [0, 0, 1, 1], [], []>} : vector<32x128xf32>, vector<128x128xf32>, vector<32x128xf32> -> vector<32x128xf32>
    %48 = vector.broadcast %3 : vector<1x128xf32> to vector<32x128xf32>
    %49 = arith.addf %47, %48 : vector<32x128xf32>
    %50 = arith.addf %49, %26 : vector<32x128xf32>
    %cst_24 = arith.constant dense<0.000000e+00> : vector<32xf32>
    %51 = vector.multi_reduction <add>, %50, %cst_24 [1] : vector<32x128xf32> to vector<32xf32>
    %52 = vector.shape_cast %51 : vector<32xf32> to vector<32x1xf32>
    %cst_25 = arith.constant 1.280000e+02 : f32
    %53 = vector.broadcast %cst_25 : f32 to vector<32x1xf32>
    %54 = arith.divf %52, %53 : vector<32x1xf32>
    %55 = vector.broadcast %54 : vector<32x1xf32> to vector<32x128xf32>
    %56 = arith.subf %50, %55 : vector<32x128xf32>
    %57 = arith.mulf %56, %56 : vector<32x128xf32>
    %cst_26 = arith.constant dense<0.000000e+00> : vector<32xf32>
    %58 = vector.multi_reduction <add>, %57, %cst_26 [1] : vector<32x128xf32> to vector<32xf32>
    %59 = vector.shape_cast %58 : vector<32xf32> to vector<32x1xf32>
    %cst_27 = arith.constant 1.280000e+02 : f32
    %60 = vector.broadcast %cst_27 : f32 to vector<32x1xf32>
    %61 = arith.divf %59, %60 : vector<32x1xf32>
    %cst_28 = arith.constant 9.99999974E-6 : f32
    %62 = vector.broadcast %cst_28 : f32 to vector<32x1xf32>
    %63 = arith.addf %61, %62 : vector<32x1xf32>
    %64 = math.rsqrt %63 : vector<32x1xf32>
    %65 = vector.broadcast %4 : vector<1x128xf32> to vector<32x128xf32>
    %66 = vector.broadcast %64 : vector<32x1xf32> to vector<32x128xf32>
    %67 = arith.mulf %65, %66 : vector<32x128xf32>
    %68 = arith.mulf %56, %67 : vector<32x128xf32>
    %69 = vector.broadcast %5 : vector<1x128xf32> to vector<32x128xf32>
    %70 = arith.addf %68, %69 : vector<32x128xf32>
    %c0_29 = arith.constant 0 : index
    %c0_30 = arith.constant 0 : index
    %71 = vector.load %arg4[%c0_29, %c0_30] : memref<32x128xf32, #tpu.memory_space<vmem>>, vector<32x128xf32>
    tpu.vector_store %arg4[%c0_29, %c0_30], %70 {strides = array<i32>} : memref<32x128xf32, #tpu.memory_space<vmem>>, vector<32x128xf32>,
    return
  }
  func.func @transform_0(%arg0: i32) -> (i32, i32) {
    %c0_i32 = arith.constant 0 : i32
    %c0_i32_0 = arith.constant 0 : i32
    return %arg0, %c0_i32 : i32, i32
  }
  func.func @transform_1(%arg0: i32) -> (i32, i32) {
    %c0_i32 = arith.constant 0 : i32
    %c0_i32_0 = arith.constant 0 : i32
    %c0_i32_1 = arith.constant 0 : i32
    return %c0_i32, %c0_i32_0 : i32, i32
  }
  func.func @transform_2(%arg0: i32) -> (i32, i32, i32) {
    %c0_i32 = arith.constant 0 : i32
    %c0_i32_0 = arith.constant 0 : i32
    %c0_i32_1 = arith.constant 0 : i32
    %c0_i32_2 = arith.constant 0 : i32
    return %c0_i32, %c0_i32_0, %c0_i32_1 : i32, i32, i32
  }
  func.func @transform_3(%arg0: i32) -> (i32, i32) {
    %c0_i32 = arith.constant 0 : i32
    %c0_i32_0 = arith.constant 0 : i32
    return %arg0, %c0_i32 : i32, i32
  }
}

</mosaic_0001>

<bundles_post_ra>
// kernel: addnorm_forward.1
= control target key start
LH: loop header
LB: loop body
LE: loop exit
PB: predicated region body
PF: predicated region fallthrough
CT: control target
= control target key end

     0   :  { %8 = vsyncpa [#allocation3], 0  ;;  %s704_s0 = inlined_call_operand.hbm [shape: f32[32,128], index: 0, kind: input, shape index: {}]   ;;  %s705_s1 = inlined_call_operand.hbm [shape: f32[6,128], index: 1, kind: input, shape index: {}]   ;;  %s706_s2 = inlined_call_operand.hbm [shape: f32[2,128,128], index: 2, kind: input, shape index: {}]   ;;  %s707_s3 = inlined_call_operand.hbm [shape: f32[32,128], index: 3, kind: output, shape index: {}]  }
   0x1   :  { %9 = vsyncpa [#allocation6], 0  ;;  %s29_s14 = sshll.u32 %s705_s1, 4  ;;  %s30_s14 = int_to_ptr.hbm [resolvable:$true] %s29_s14 }
   0x2   :  { %10 = vsyncpa [#allocation4], 0  ;;  %s587_s15 = smov [#allocation5]   ;;  %s15_s19 = sshll.u32 %s704_s0, 4  ;;  %s16_s19 = int_to_ptr.hbm [resolvable:$true] %s15_s19 }
   0x3   :  { %s31_s16 = sshll.u32 %s587_s15, 4  ;;  %s588_s20 = smov [#allocation2]   ;;  %s32_s16 = int_to_ptr.vmem [resolvable:$true] %s31_s16 }
   0x4   :  { %34 = dma.hbm_to_vmem [thread:$0]  %s30_s14, 128, %s32_s16, [#allocation6]  }
   0x5   :  { %s17_s21 = sshll.u32 %s588_s20, 4  ;;  %s589_s22 = smov 128   ;;  %s18_s21 = int_to_ptr.vmem [resolvable:$true] %s17_s21 }
   0x6   :  { %s590_s23 = smov 8   ;;  %s39_s25 = sshll.u32 %s706_s2, 4  ;;  %s40_s25 = int_to_ptr.hbm [resolvable:$true] %s39_s25 }
   0x7   :  { %23 = dma.hbm_to_vmem [thread:$0]  %s16_s19, 512, %s18_s21, [#allocation3], %s589_s22, %s589_s22, %s590_s23  }
   0x8   :  { %s591_s26 = smov [#allocation7]  }
   0x9   :  { %s41_s27 = sshll.u32 %s591_s26, 4  ;;  %s42_s27 = int_to_ptr.vmem [resolvable:$true] %s41_s27 }
   0xa   :  { %47 = dma.hbm_to_vmem [thread:$0]  %s40_s25, 4096, %s42_s27, [#allocation6], %s589_s22, %s589_s22, %s590_s23  }
   0xb   :  { %581 = dma.done.wait [#allocation3], 512  }
   0xc   :  { %582 = vsyncadd [#allocation3], 4294966784 }
   0xd   :  { %583 = dma.done.wait [#allocation6], 4224  }
   0xe   :  { %584 = vsyncadd [#allocation6], 4294963072  ;;  %v68_v0 = vld [vmem:[#allocation2 + $0x10] sm:$0xff]  ;;  %v66_v1 = vld [vmem:[#allocation2] sm:$0xff]  ;;  %v592_v4 = vmov 128.0   ;;  %s593_s0 = smov [#allocation8]  }
   0xf   :  { %74 = vadd.xlane.f32.xlu0 %v68_v0  ;;  %70 = vadd.xlane.f32.xlu1 %v66_v1  ;;  %v69_v2 = vld [vmem:[#allocation2 + $0x18] sm:$0xff]  ;;  %v67_v3 = vld [vmem:[#allocation2 + $0x8] sm:$0xff]  ;;  %459 = vrcp.f32 %v592_v4  ;;  %v182_v7 = vld [vmem:[#allocation7 + $0x78] sm:$0xff]  ;;  %s398_s2 = sshll.u32 %s593_s0, 4  ;;  %s400_s30 = sshll.u32 %s707_s3, 4  ;;  %s399_s2 = int_to_ptr.vmem [resolvable:$true] %s398_s2  ;;  %s401_s30 = int_to_ptr.hbm [resolvable:$true] %s400_s30 }
  0x10   :  { %v181_v8 = vld [vmem:[#allocation7 + $0x70] sm:$0xff]  ;;  %184 = vmatpush.msra.mxu0 %v182_v7  ;;  %414 = vmatpush.msra.mxu2 %v182_v7  ;;  %v180_v29 = vld [vmem:[#allocation7 + $0x68] sm:$0xff]  ;;  %v179_v30 = vld [vmem:[#allocation7 + $0x60] sm:$0xff] }
  0x11   :  { %v178_v31 = vld [vmem:[#allocation7 + $0x58] sm:$0xff]  ;;  %v177_v32 = vld [vmem:[#allocation7 + $0x50] sm:$0xff]  ;;  %v176_v33 = vld [vmem:[#allocation7 + $0x48] sm:$0xff] }
  0x12   :  { %185 = vmatpush.msra.mxu0 %v181_v8  ;;  %415 = vmatpush.msra.mxu2 %v181_v8  ;;  %v175_v34 = vld [vmem:[#allocation7 + $0x40] sm:$0xff]  ;;  %v174_v35 = vld [vmem:[#allocation7 + $0x38] sm:$0xff]  ;;  %v173_v36 = vld [vmem:[#allocation7 + $0x30] sm:$0xff] }
  0x13   :  { %v172_v37 = vld [vmem:[#allocation7 + $0x28] sm:$0xff]  ;;  %v171_v38 = vld [vmem:[#allocation7 + $0x20] sm:$0xff]  ;;  %v170_v39 = vld [vmem:[#allocation7 + $0x18] sm:$0xff] }
  0x14   :  { %186 = vmatpush.msra.mxu0 %v180_v29  ;;  %416 = vmatpush.msra.mxu2 %v180_v29  ;;  %v169_v40 = vld [vmem:[#allocation7 + $0x10] sm:$0xff]  ;;  %v168_v41 = vld [vmem:[#allocation7 + $0x8] sm:$0xff]  ;;  %v167_v42 = vld [vmem:[#allocation7] sm:$0xff] }
  0x15   :  { %v460_v5 = vpop.eup %459  ;;  %v265_v49 = vld [vmem:[#allocation7 + $0xf8] sm:$0xff]  ;;  %v264_v50 = vld [vmem:[#allocation7 + $0xf0] sm:$0xff]  ;;  %v263_v53 = vld [vmem:[#allocation7 + $0xe8] sm:$0xff] }
  0x16   :  { %v79_v6 = vmul.f32 128.0, %v460_v5  ;;  %vm83_vm0 = vweird.f32 %v460_v5  ;;  %187 = vmatpush.msra.mxu0 %v179_v30  ;;  %417 = vmatpush.msra.mxu2 %v179_v30  ;;  %v262_v56 = vld [vmem:[#allocation7 + $0xe0] sm:$0xff] }
  0x17   :  { %76 = vadd.xlane.f32.xlu0 %v69_v2  ;;  %72 = vadd.xlane.f32.xlu1 %v67_v3 }
  0x18   :  { %v80_v9 = vsub.f32 1.0, %v79_v6  ;;  %188 = vmatpush.msra.mxu0 %v178_v31  ;;  %418 = vmatpush.msra.mxu2 %v178_v31  ;;  %v453_v6 = vld [vmem:[#allocation5] ss:$0 sm:$0xff] }
  0x19   :  { %267 = vmatpush.msra.mxu1 %v265_v49  ;;  %430 = vmatpush.msra.mxu3 %v265_v49  ;;  %v250_v49 = vld [vmem:[#allocation7 + $0x80] sm:$0xff] }
  0x1a   :  { %v81_v10 = vmul.f32 %v460_v5, %v80_v9  ;;  %189 = vmatpush.msra.mxu0 %v177_v32  ;;  %419 = vmatpush.msra.mxu2 %v177_v32 }
  0x1b   :  { %268 = vmatpush.msra.mxu1 %v264_v50  ;;  %431 = vmatpush.msra.mxu3 %v264_v50  ;;  %v455_v50 = vld [vmem:[#allocation5 + $0x2] ss:$0 sm:$0xff] }
  0x1c   :  { %v82_v11 = vadd.f32 %v460_v5, %v81_v10  ;;  %190 = vmatpush.msra.mxu0 %v176_v33  ;;  %420 = vmatpush.msra.mxu2 %v176_v33 }
  0x1d   :  { %269 = vmatpush.msra.mxu1 %v263_v53  ;;  %432 = vmatpush.msra.mxu3 %v263_v53 }
  0x1e   :  { %v629_v12 = vsel %vm83_vm0, %v460_v5, %v82_v11  ;;  %191 = vmatpush.msra.mxu0 %v175_v34  ;;  %421 = vmatpush.msra.mxu2 %v175_v34 }
  0x1f   :  { %270 = vmatpush.msra.mxu1 %v262_v56  ;;  %433 = vmatpush.msra.mxu3 %v262_v56 }
  0x20   :  { %192 = vmatpush.msra.mxu0 %v174_v35  ;;  %422 = vmatpush.msra.mxu2 %v174_v35 }
  0x22   :  { %193 = vmatpush.msra.mxu0 %v173_v36  ;;  %423 = vmatpush.msra.mxu2 %v173_v36 }
  0x24   :  { %194 = vmatpush.msra.mxu0 %v172_v37  ;;  %424 = vmatpush.msra.mxu2 %v172_v37 }
  0x26   :  { %195 = vmatpush.msra.mxu0 %v171_v38  ;;  %425 = vmatpush.msra.mxu2 %v171_v38 }
  0x28   :  { %196 = vmatpush.msra.mxu0 %v170_v39  ;;  %426 = vmatpush.msra.mxu2 %v170_v39 }
  0x2a   :  { %197 = vmatpush.msra.mxu0 %v169_v40  ;;  %427 = vmatpush.msra.mxu2 %v169_v40  ;;  %v261_v40 = vld [vmem:[#allocation7 + $0xd8] sm:$0xff] }
  0x2b   :  { %271 = vmatpush.msra.mxu1 %v261_v40  ;;  %434 = vmatpush.msra.mxu3 %v261_v40 }
  0x2c   :  { %198 = vmatpush.msra.mxu0 %v168_v41  ;;  %428 = vmatpush.msra.mxu2 %v168_v41  ;;  %v260_v41 = vld [vmem:[#allocation7 + $0xd0] sm:$0xff] }
  0x2d   :  { %272 = vmatpush.msra.mxu1 %v260_v41  ;;  %435 = vmatpush.msra.mxu3 %v260_v41 }
  0x2e   :  { %199 = vmatpush.msra.mxu0 %v167_v42  ;;  %429 = vmatpush.msra.mxu2 %v167_v42  ;;  %v259_v42 = vld [vmem:[#allocation7 + $0xc8] sm:$0xff] }
  0x2f   :  { %273 = vmatpush.msra.mxu1 %v259_v42  ;;  %436 = vmatpush.msra.mxu3 %v259_v42 }
  0x82   :  { %v75_v13 = vpop.xlane.xlu0 %74  ;;  %v71_v14 = vpop.xlane.xlu1 %70 }
  0x83   :  { %v87_v15 = vmul.f32 %v629_v12, %v75_v13  ;;  %v85_v16 = vmul.f32 %v629_v12, %v71_v14 }
  0x85   :  { %v633_v17 = vsub.f32 %v66_v1, %v85_v16  ;;  %v635_v18 = vsub.f32 %v68_v0, %v87_v15 }
  0x87   :  { %v95_v19 = vmul.f32 %v635_v18, %v635_v18  ;;  %v93_v20 = vmul.f32 %v633_v17, %v633_v17 }
  0x89   :  { %101 = vadd.xlane.f32.xlu2 %v95_v19  ;;  %97 = vadd.xlane.f32.xlu0 %v93_v20  ;;  %v454_v19 = vld [vmem:[#allocation5 + $0x1] ss:$0 sm:$0xff] }
  0x8a   :  { %v77_v21 = vpop.xlane.xlu0 %76  ;;  %v73_v22 = vpop.xlane.xlu1 %72 }
  0x8b   :  { %v88_v23 = vmul.f32 %v629_v12, %v77_v21  ;;  %v86_v24 = vmul.f32 %v629_v12, %v73_v22 }
  0x8d   :  { %v643_v25 = vsub.f32 %v69_v2, %v88_v23  ;;  %v645_v26 = vsub.f32 %v67_v3, %v86_v24 }
  0x8f   :  { %v96_v27 = vmul.f32 %v643_v25, %v643_v25  ;;  %v94_v28 = vmul.f32 %v645_v26, %v645_v26 }
  0x91   :  { %103 = vadd.xlane.f32.xlu2 %v96_v27  ;;  %99 = vadd.xlane.f32.xlu1 %v94_v28 }
  0xfc   :  { %v102_v43 = vpop.xlane.xlu2 %101  ;;  %v98_v44 = vpop.xlane.xlu0 %97 }
  0xfd   :  { %v107_v45 = vmul.f32 %v102_v43, %v629_v12  ;;  %v105_v46 = vmul.f32 %v98_v44, %v629_v12  ;;  %v256_v43 = vld [vmem:[#allocation7 + $0xb0] sm:$0xff]  ;;  %v255_v44 = vld [vmem:[#allocation7 + $0xa8] sm:$0xff] }
  0xff   :  { %v111_v47 = vadd.f32 1e-05, %v107_v45  ;;  %v109_v48 = vadd.f32 1e-05, %v105_v46  ;;  %v254_v45 = vld [vmem:[#allocation7 + $0xa0] sm:$0xff]  ;;  %v253_v46 = vld [vmem:[#allocation7 + $0x98] sm:$0xff] }
 0x101   :  { %461 = vrsqrt.f32 %v111_v47  ;;  %vm119_vm2 = vweird.f32 %v109_v48  ;;  %vm139_vm4 = vweird.f32 %v111_v47 }
 0x102   :  { %463 = vrsqrt.f32 %v109_v48 }
 0x104   :  { %v104_v51 = vpop.xlane.xlu2 %103  ;;  %v100_v52 = vpop.xlane.xlu1 %99 }
 0x105   :  { %v108_v54 = vmul.f32 %v104_v51, %v629_v12  ;;  %v106_v55 = vmul.f32 %v100_v52, %v629_v12 }
 0x107   :  { %v462_v57 = vpop.eup %461  ;;  %v112_v58 = vadd.f32 1e-05, %v108_v54  ;;  %v110_v59 = vadd.f32 1e-05, %v106_v55 }
 0x108   :  { %v464_v60 = vpop.eup %463  ;;  %v134_v61 = vmul.f32 %v462_v57, %v111_v47  ;;  %vm140_vm1 = vweird.f32 %v462_v57  ;;  %v252_v47 = vld [vmem:[#allocation7 + $0x90] sm:$0xff] }
 0x109   :  { %v114_v62 = vmul.f32 %v464_v60, %v109_v48  ;;  %465 = vrsqrt.f32 %v112_v58  ;;  %vm120_vm3 = vweird.f32 %v464_v60  ;;  %vm141_vm5 = vmor %vm139_vm4, %vm140_vm1  ;;  %vm129_vm8 = vweird.f32 %v110_v59  ;;  %v251_v48 = vld [vmem:[#allocation7 + $0x88] sm:$0xff] }
 0x10a   :  { %v135_v63 = vmul.f32 %v462_v57, %v134_v61  ;;  %467 = vrsqrt.f32 %v110_v59  ;;  %vm121_vm6 = vmor %vm119_vm2, %vm120_vm3  ;;  %vm149_vm10 = vweird.f32 %v112_v58 }
 0x10b   :  { %v115_v0 = vmul.f32 %v464_v60, %v114_v62 }
 0x10c   :  { %v136_v1 = vmul.f32 0.5, %v135_v63 }
 0x10d   :  { %v116_v2 = vmul.f32 0.5, %v115_v0 }
 0x10e   :  { %v137_v3 = vsub.f32 1.5, %v136_v1 }
 0x10f   :  { %v466_v4 = vpop.eup %465  ;;  %v117_v5 = vsub.f32 1.5, %v116_v2 }
 0x110   :  { %v468_v7 = vpop.eup %467  ;;  %v138_v8 = vmul.f32 %v462_v57, %v137_v3  ;;  %v144_v9 = vmul.f32 %v466_v4, %v112_v58  ;;  %vm150_vm7 = vweird.f32 %v466_v4 }
 0x111   :  { %v118_v10 = vmul.f32 %v464_v60, %v117_v5  ;;  %v124_v11 = vmul.f32 %v468_v7, %v110_v59  ;;  %vm130_vm9 = vweird.f32 %v468_v7  ;;  %vm151_vm11 = vmor %vm149_vm10, %vm150_vm7 }
 0x112   :  { %v145_v13 = vmul.f32 %v466_v4, %v144_v9  ;;  %v142_v14 = vsel %vm141_vm5, %v462_v57, %v138_v8  ;;  %vm131_vm12 = vmor %vm129_vm8, %vm130_vm9 }
 0x113   :  { %v125_v15 = vmul.f32 %v468_v7, %v124_v11  ;;  %v122_v16 = vsel %vm121_vm6, %v464_v60, %v118_v10  ;;  %v156_v20 = vmul.f32 %v453_v6, %v142_v14 }
 0x114   :  { %v146_v21 = vmul.f32 0.5, %v145_v13  ;;  %v154_v22 = vmul.f32 %v453_v6, %v122_v16 }
 0x115   :  { %v126_v23 = vmul.f32 0.5, %v125_v15  ;;  %v160_v24 = vmul.f32 %v156_v20, %v635_v18 }
 0x116   :  { %v147_v27 = vsub.f32 1.5, %v146_v21  ;;  %v158_v28 = vmul.f32 %v154_v22, %v633_v17 }
 0x117   :  { %v127_v29 = vsub.f32 1.5, %v126_v23  ;;  %v657_v30 = vadd.f32 %v454_v19, %v160_v24 }
 0x118   :  { %v148_v31 = vmul.f32 %v466_v4, %v147_v27  ;;  %v659_v32 = vadd.f32 %v454_v19, %v158_v28 }
 0x119   :  { %v128_v33 = vmul.f32 %v468_v7, %v127_v29  ;;  %206 = vmatmul.f32.vlgmr.msra.gmra.mxu2 %v657_v30 }
 0x11a   :  { %200 = vmatmul.f32.vlgmr.msra.gmra.mxu0 %v659_v32  ;;  %v152_v18 = vsel %vm151_vm11, %v466_v4, %v148_v31 }
 0x11b   :  { %v132_v34 = vsel %vm131_vm12, %v468_v7, %v128_v33  ;;  %v157_v35 = vmul.f32 %v453_v6, %v152_v18 }
 0x11c   :  { %v155_v17 = vmul.f32 %v453_v6, %v132_v34 }
 0x11d   :  { %v161_v36 = vmul.f32 %v157_v35, %v643_v25  ;;  %v258_v25 = vld [vmem:[#allocation7 + $0xc0] sm:$0xff] }
 0x11e   :  { %v159_v37 = vmul.f32 %v155_v17, %v645_v26  ;;  %274 = vmatpush.msra.mxu1 %v258_v25  ;;  %437 = vmatpush.msra.mxu3 %v258_v25  ;;  %v257_v26 = vld [vmem:[#allocation7 + $0xb8] sm:$0xff] }
 0x11f   :  { %v665_v38 = vadd.f32 %v454_v19, %v161_v36  ;;  %v456_v36 = vld [vmem:[#allocation5 + $0x3] ss:$0 sm:$0xff] }
 0x120   :  { %v667_v39 = vadd.f32 %v454_v19, %v159_v37  ;;  %275 = vmatpush.msra.mxu1 %v257_v26  ;;  %438 = vmatpush.msra.mxu3 %v257_v26 }
 0x121   :  { %209 = vmatmul.f32.gmra.mxu2 %v665_v38 }
 0x122   :  { %203 = vmatmul.f32.gmra.mxu0 %v667_v39  ;;  %276 = vmatpush.msra.mxu1 %v256_v43 }
 0x123   :  { %439 = vmatpush.msra.mxu3 %v256_v43 }
 0x124   :  { %277 = vmatpush.msra.mxu1 %v255_v44 }
 0x125   :  { %440 = vmatpush.msra.mxu3 %v255_v44 }
 0x126   :  { %278 = vmatpush.msra.mxu1 %v254_v45 }
 0x127   :  { %441 = vmatpush.msra.mxu3 %v254_v45 }
 0x128   :  { %279 = vmatpush.msra.mxu1 %v253_v46 }
 0x129   :  { %442 = vmatpush.msra.mxu3 %v253_v46 }
 0x12a   :  { %280 = vmatpush.msra.mxu1 %v252_v47 }
 0x12b   :  { %443 = vmatpush.msra.mxu3 %v252_v47 }
 0x12c   :  { %281 = vmatpush.msra.mxu1 %v251_v48 }
 0x12d   :  { %444 = vmatpush.msra.mxu3 %v251_v48 }
 0x12e   :  { %282 = vmatpush.msra.mxu1 %v250_v49 }
 0x12f   :  { %445 = vmatpush.msra.mxu3 %v250_v49 }
 0x197   :  { %v201_v51 = vpop.f32.mrf.mxu0 }
 0x198   :  { %v202_v52 = vadd.f32 %v455_v50, %v201_v51 }
 0x19a   :  { %v217_v53 = vmul.f32 0.044715, %v202_v52  ;;  %v213_v14 = vmul.f32 0.5, %v202_v52 }
 0x19c   :  { %v207_v54 = vpop.f32.mrf.mxu2  ;;  %v221_v55 = vmul.f32 %v217_v53, %v202_v52 }
 0x19d   :  { %v208_v56 = vadd.f32 %v455_v50, %v207_v54 }
 0x19e   :  { %v225_v57 = vmul.f32 %v221_v55, %v202_v52 }
 0x19f   :  { %v204_v58 = vpop.f32.mrf.mxu0  ;;  %v219_v59 = vmul.f32 0.044715, %v208_v56  ;;  %v215_v23 = vmul.f32 0.5, %v208_v56 }
 0x1a0   :  { %v205_v60 = vadd.f32 %v455_v50, %v204_v58  ;;  %v229_v61 = vadd.f32 %v225_v57, %v202_v52 }
 0x1a1   :  { %v223_v62 = vmul.f32 %v219_v59, %v208_v56 }
 0x1a2   :  { %v233_v63 = vmul.f32 0.7978846, %v229_v61  ;;  %v218_v0 = vmul.f32 0.044715, %v205_v60  ;;  %v214_v29 = vmul.f32 0.5, %v205_v60 }
 0x1a3   :  { %v227_v1 = vmul.f32 %v223_v62, %v208_v56 }
 0x1a4   :  { %v210_v2 = vpop.f32.mrf.mxu2  ;;  %469 = vtanh.f32 %v233_v63  ;;  %v222_v3 = vmul.f32 %v218_v0, %v205_v60 }
 0x1a5   :  { %v211_v4 = vadd.f32 %v455_v50, %v210_v2  ;;  %v231_v5 = vadd.f32 %v227_v1, %v208_v56 }
 0x1a6   :  { %v226_v6 = vmul.f32 %v222_v3, %v205_v60 }
 0x1a7   :  { %v235_v7 = vmul.f32 0.7978846, %v231_v5  ;;  %v220_v8 = vmul.f32 0.044715, %v211_v4  ;;  %v216_v34 = vmul.f32 0.5, %v211_v4 }
 0x1a8   :  { %v230_v9 = vadd.f32 %v226_v6, %v205_v60 }
 0x1a9   :  { %471 = vtanh.f32 %v235_v7  ;;  %v224_v10 = vmul.f32 %v220_v8, %v211_v4 }
 0x1aa   :  { %v470_v11 = vpop.eup %469  ;;  %v234_v13 = vmul.f32 0.7978846, %v230_v9 }
 0x1ab   :  { %v241_v15 = vadd.f32 1.0, %v470_v11  ;;  %v228_v16 = vmul.f32 %v224_v10, %v211_v4 }
 0x1ac   :  { %473 = vtanh.f32 %v234_v13  ;;  %v457_v13 = vld [vmem:[#allocation5 + $0x4] ss:$0 sm:$0xff] }
 0x1ad   :  { %v245_v19 = vmul.f32 %v241_v15, %v213_v14  ;;  %v232_v20 = vadd.f32 %v228_v16, %v211_v4 }
 0x1af   :  { %v472_v21 = vpop.eup %471  ;;  %283 = vmatmul.f32.vlgmr.msra.gmra.mxu1 %v245_v19  ;;  %v236_v22 = vmul.f32 0.7978846, %v232_v20 }
 0x1b0   :  { %v243_v24 = vadd.f32 1.0, %v472_v21 }
 0x1b1   :  { %475 = vtanh.f32 %v236_v22 }
 0x1b2   :  { %v474_v27 = vpop.eup %473  ;;  %v247_v28 = vmul.f32 %v243_v24, %v215_v23 }
 0x1b3   :  { %v242_v31 = vadd.f32 1.0, %v474_v27 }
 0x1b4   :  { %289 = vmatmul.f32.vlgmr.msra.gmra.mxu3 %v247_v28  ;;  %v458_v28 = vld [vmem:[#allocation5 + $0x5] ss:$0 sm:$0xff] }
 0x1b5   :  { %v246_v33 = vmul.f32 %v242_v31, %v214_v29 }
 0x1b7   :  { %v476_v18 = vpop.eup %475  ;;  %286 = vmatmul.f32.gmra.mxu1 %v246_v33 }
 0x1b8   :  { %v244_v35 = vadd.f32 1.0, %v476_v18 }
 0x1ba   :  { %v248_v17 = vmul.f32 %v244_v35, %v216_v34 }
 0x1bc   :  { %292 = vmatmul.f32.gmra.mxu3 %v248_v17 }
 0x22c   :  { %v284_v37 = vpop.f32.mrf.mxu1 }
 0x22d   :  { %v285_v40 = vadd.f32 %v456_v36, %v284_v37 }
 0x22f   :  { %v296_v41 = vadd.f32 %v285_v40, %v659_v32 }
 0x231   :  { %300 = vadd.xlane.f32.xlu2 %v296_v41 }
 0x234   :  { %v287_v42 = vpop.f32.mrf.mxu1 }
 0x235   :  { %v288_v25 = vadd.f32 %v456_v36, %v287_v42 }
 0x237   :  { %v290_v26 = vpop.f32.mrf.mxu3  ;;  %v297_v43 = vadd.f32 %v288_v25, %v667_v39 }
 0x238   :  { %v291_v44 = vadd.f32 %v456_v36, %v290_v26 }
 0x239   :  { %302 = vadd.xlane.f32.xlu0 %v297_v43 }
 0x23a   :  { %v298_v45 = vadd.f32 %v291_v44, %v657_v30 }
 0x23c   :  { %304 = vadd.xlane.f32.xlu1 %v298_v45 }
 0x23f   :  { %v293_v46 = vpop.f32.mrf.mxu3 }
 0x240   :  { %v294_v47 = vadd.f32 %v456_v36, %v293_v46 }
 0x242   :  { %v299_v48 = vadd.f32 %v294_v47, %v665_v38 }
 0x244   :  { %306 = vadd.xlane.f32.xlu2 %v299_v48 }
 0x2a4   :  { %v301_v49 = vpop.xlane.xlu2 %300 }
 0x2a5   :  { %v308_v50 = vmul.f32 %v301_v49, %v629_v12 }
 0x2a7   :  { %v312_v32 = vsub.f32 %v296_v41, %v308_v50 }
 0x2a9   :  { %v316_v51 = vmul.f32 %v312_v32, %v312_v32 }
 0x2ab   :  { %320 = vadd.xlane.f32.xlu0 %v316_v51 }
 0x2ac   :  { %v303_v52 = vpop.xlane.xlu0 %302 }
 0x2ad   :  { %v309_v53 = vmul.f32 %v303_v52, %v629_v12 }
 0x2af   :  { %v677_v39 = vsub.f32 %v297_v43, %v309_v53  ;;  %v305_v54 = vpop.xlane.xlu1 %304 }
 0x2b0   :  { %v310_v30 = vmul.f32 %v305_v54, %v629_v12 }
 0x2b1   :  { %v317_v55 = vmul.f32 %v677_v39, %v677_v39 }
 0x2b2   :  { %v682_v56 = vsub.f32 %v298_v45, %v310_v30 }
 0x2b3   :  { %322 = vadd.xlane.f32.xlu1 %v317_v55 }
 0x2b4   :  { %v318_v38 = vmul.f32 %v682_v56, %v682_v56 }
 0x2b6   :  { %324 = vadd.xlane.f32.xlu2 %v318_v38 }
 0x2b7   :  { %v307_v57 = vpop.xlane.xlu2 %306 }
 0x2b8   :  { %v311_v58 = vmul.f32 %v307_v57, %v629_v12 }
 0x2ba   :  { %v687_v59 = vsub.f32 %v299_v48, %v311_v58 }
 0x2bc   :  { %v319_v60 = vmul.f32 %v687_v59, %v687_v59 }
 0x2be   :  { %326 = vadd.xlane.f32.xlu0 %v319_v60 }
 0x31e   :  { %v321_v61 = vpop.xlane.xlu0 %320 }
 0x31f   :  { %v328_v62 = vmul.f32 %v321_v61, %v629_v12 }
 0x321   :  { %v332_v63 = vadd.f32 1e-05, %v328_v62 }
 0x323   :  { %477 = vrsqrt.f32 %v332_v63  ;;  %vm342_vm14 = vweird.f32 %v332_v63 }
 0x326   :  { %v323_v0 = vpop.xlane.xlu1 %322 }
 0x327   :  { %v329_v1 = vmul.f32 %v323_v0, %v629_v12 }
 0x329   :  { %v478_v2 = vpop.eup %477  ;;  %v333_v3 = vadd.f32 1e-05, %v329_v1  ;;  %v325_v4 = vpop.xlane.xlu2 %324 }
 0x32a   :  { %v337_v5 = vmul.f32 %v478_v2, %v332_v63  ;;  %v330_v6 = vmul.f32 %v325_v4, %v629_v12  ;;  %vm343_vm13 = vweird.f32 %v478_v2 }
 0x32b   :  { %479 = vrsqrt.f32 %v333_v3  ;;  %vm344_vm15 = vmor %vm342_vm14, %vm343_vm13  ;;  %vm352_vm1 = vweird.f32 %v333_v3 }
 0x32c   :  { %v338_v7 = vmul.f32 %v478_v2, %v337_v5  ;;  %v334_v8 = vadd.f32 1e-05, %v330_v6 }
 0x32e   :  { %v339_v9 = vmul.f32 0.5, %v338_v7  ;;  %481 = vrsqrt.f32 %v334_v8  ;;  %vm362_vm4 = vweird.f32 %v334_v8 }
 0x330   :  { %v340_v10 = vsub.f32 1.5, %v339_v9 }
 0x331   :  { %v480_v11 = vpop.eup %479  ;;  %v327_v14 = vpop.xlane.xlu0 %326 }
 0x332   :  { %v341_v15 = vmul.f32 %v478_v2, %v340_v10  ;;  %v347_v16 = vmul.f32 %v480_v11, %v333_v3  ;;  %v331_v19 = vmul.f32 %v327_v14, %v629_v12  ;;  %vm353_vm0 = vweird.f32 %v480_v11 }
 0x333   :  { %vm354_vm2 = vmor %vm352_vm1, %vm353_vm0 }
 0x334   :  { %v482_v20 = vpop.eup %481  ;;  %v345_v21 = vsel %vm344_vm15, %v478_v2, %v341_v15  ;;  %v348_v22 = vmul.f32 %v480_v11, %v347_v16  ;;  %v335_v23 = vadd.f32 1e-05, %v331_v19 }
 0x335   :  { %v377_v24 = vmul.f32 %v457_v13, %v345_v21  ;;  %v357_v27 = vmul.f32 %v482_v20, %v334_v8  ;;  %vm363_vm3 = vweird.f32 %v482_v20 }
 0x336   :  { %v349_v29 = vmul.f32 0.5, %v348_v22  ;;  %483 = vrsqrt.f32 %v335_v23  ;;  %vm364_vm5 = vmor %vm362_vm4, %vm363_vm3  ;;  %vm372_vm7 = vweird.f32 %v335_v23 }
 0x337   :  { %v381_v31 = vmul.f32 %v377_v24, %v312_v32  ;;  %v358_v33 = vmul.f32 %v482_v20, %v357_v27 }
 0x338   :  { %v350_v18 = vsub.f32 1.5, %v349_v29 }
 0x339   :  { %v359_v34 = vmul.f32 0.5, %v358_v33  ;;  %v386_v35 = vadd.f32 %v458_v28, %v381_v31 }
 0x33a   :  { %v351_v17 = vmul.f32 %v480_v11, %v350_v18 }
 0x33b   :  { %v360_v12 = vsub.f32 1.5, %v359_v34  ;;  %390 = vst [vmem:[#allocation8] sm:$0xff] %v386_v35 }
 0x33c   :  { %v484_v36 = vpop.eup %483  ;;  %v355_v37 = vsel %vm354_vm2, %v480_v11, %v351_v17 }
 0x33d   :  { %v378_v40 = vmul.f32 %v457_v13, %v355_v37  ;;  %v361_v41 = vmul.f32 %v482_v20, %v360_v12  ;;  %v367_v42 = vmul.f32 %v484_v36, %v335_v23  ;;  %vm373_vm6 = vweird.f32 %v484_v36 }
 0x33e   :  { %vm374_vm8 = vmor %vm372_vm7, %vm373_vm6 }
 0x33f   :  { %v382_v25 = vmul.f32 %v378_v40, %v677_v39  ;;  %v365_v26 = vsel %vm364_vm5, %v482_v20, %v361_v41  ;;  %v368_v43 = vmul.f32 %v484_v36, %v367_v42 }
 0x340   :  { %v379_v44 = vmul.f32 %v457_v13, %v365_v26 }
 0x341   :  { %v369_v45 = vmul.f32 0.5, %v368_v43  ;;  %v387_v46 = vadd.f32 %v458_v28, %v382_v25 }
 0x342   :  { %v383_v47 = vmul.f32 %v379_v44, %v682_v56 }
 0x343   :  { %v370_v48 = vsub.f32 1.5, %v369_v45  ;;  %391 = vst [vmem:[#allocation8 + $0x8] sm:$0xff] %v387_v46 }
 0x344   :  { %v388_v49 = vadd.f32 %v458_v28, %v383_v47 }
 0x345   :  { %v371_v50 = vmul.f32 %v484_v36, %v370_v48 }
 0x346   :  { %392 = vst [vmem:[#allocation8 + $0x10] sm:$0xff] %v388_v49 }
 0x347   :  { %v375_v32 = vsel %vm374_vm8, %v484_v36, %v371_v50 }
 0x348   :  { %v380_v51 = vmul.f32 %v457_v13, %v375_v32 }
 0x34a   :  { %v384_v52 = vmul.f32 %v380_v51, %v687_v59 }
 0x34c   :  { %v389_v53 = vadd.f32 %v458_v28, %v384_v52 }
 0x34e   :  { %393 = vst [vmem:[#allocation8 + $0x18] sm:$0xff] %v389_v53 }
 0x34f   :  { %406 = dma.vmem_to_hbm [thread:$0]  %s399_s2, 512, %s401_s30, [#allocation4], %s589_s22, %s589_s22, %s590_s23  }
 0x350   :  { %585 = dma.done.wait [#allocation4], 512  }
 0x351   :  { %586 = vsyncadd [#allocation4], 4294966784 }
 0x352   :  { %411 = vsyncpa [#allocation3], 1 }
 0x353   :  { %412 = vsyncpa [#allocation6], 1 }
 0x354   :  { %413 = vsyncpa [#allocation4], 1 }

</bundles_post_ra>
